<compile_context>
chip_gen: v6e
topology: v6e:2x2x1
jax: 0.10.0
libtpu: 0.0.40
codegen_flags: <defaults>
</compile_context>

<pallas_src>
import jax
import jax.numpy as jnp
from jax.experimental import pallas as pl
from jax.experimental.pallas import tpu as pltpu

NUM_BOND_TYPE = 6
NUM_BOND_DIRECTION = 6
LANE = 128


def _round_up(v, m):
    return (v + m - 1) // m * m


def _default_tile_n():
    # v6e / v7x have a 256-wide MXU -> 256-row target tiles; v5e is 128-wide.
    try:
        kind = jax.devices()[0].device_kind.lower()
    except Exception:
        return 256
    if "v5 lite" in kind or "v5e" in kind or "v5litepod" in kind:
        return 128
    return 256


def _stage1_tile(np_rows, tile_n, cap=1024):
    # Largest multiple of tile_n that divides Np and is <= cap (Wenc is resident,
    # so bigger row tiles only cost VMEM and cut per-grid-step overhead).
    n_tiles = np_rows // tile_n
    best = 1
    for f in range(1, n_tiles + 1):
        if n_tiles % f == 0 and tile_n * f <= cap:
            best = f
    return tile_n * best


# ---------------- Stage 1: h = enc_to_dec(PReLU(x)); emit bf16 h and h+esum ----------------

def encode_kernel(a_ref, x_ref, wenc_t_ref, esum_ref, hbf_ref, hpe_ref):
    a = a_ref[0, 0]                                    # PReLU slope (SMEM scalar)
    x = x_ref[...]                                     # (TM, Hp) f32
    xa = jnp.where(x > 0, x, a * x)                    # PReLU on VPU, f32
    h = jnp.dot(xa.astype(jnp.bfloat16), wenc_t_ref[...],
                preferred_element_type=jnp.float32)    # (TM, Hp) f32
    hbf_ref[...] = h.astype(jnp.bfloat16)              # fused bf16 copy for A @ h
    hpe_ref[...] = h + esum_ref[...]                   # self-loop + edge-emb sums folded in


# ---------------- Stage 2: aggr = A @ h + (h + esum) ; out = MLP(aggr) ----------------

def decode_kernel(adj_ref, hs_ref, hpe_ref, w1t_ref, b1_ref, w2t_ref, b2_ref, out_ref):
    # adj_ref: (TN, Np) bf16 row panel of the diagonal-free adjacency
    # hs_ref : (Np, Hp) bf16, VMEM-resident across the whole grid
    aggr = jnp.dot(adj_ref[...], hs_ref[...],
                   preferred_element_type=jnp.float32) + hpe_ref[...]
    z = jnp.dot(aggr.astype(jnp.bfloat16), w1t_ref[...],
                preferred_element_type=jnp.float32) + b1_ref[...]
    z = z * pl.reciprocal(1.0 + jnp.exp(-z), approx=True)     # SiLU (exp + rcp on EUP)
    out_ref[...] = jnp.dot(z.astype(jnp.bfloat16), w2t_ref[...],
                           preferred_element_type=jnp.float32) + b2_ref[...]


# ---------------- Wrapper ----------------

def gnn_decoder_forward(params, x, edge_index, edge_attr, *, tile_n=None):
    N, H = x.shape
    out_dim = params["w2"].shape[0]

    if tile_n is None:
        tile_n = _default_tile_n()

    Np = _round_up(max(N, tile_n), tile_n)
    Hp = _round_up(H, LANE)
    H2p = _round_up(2 * H, LANE)
    Op = _round_up(out_dim, LANE)

    f32, bf16 = jnp.float32, jnp.bfloat16

    # ---- plain-JAX glue: edge embeddings, per-target sums, diagonal-free adjacency ----
    src = edge_index[0]
    tgt = edge_index[1]
    edge_emb = (params["edge_emb1"][edge_attr[:, 0]]
                + params["edge_emb2"][edge_attr[:, 1]])               # (E, H)
    self_loop_emb = params["edge_emb1"][5] + params["edge_emb2"][0]   # (H,), attr=[5,0]

    # Only real nodes get the self-loop embedding; padded rows stay exactly zero.
    esum = jnp.zeros((N, H), f32).at[tgt].add(edge_emb) + self_loop_emb
    esum_p = jnp.zeros((Np, Hp), f32).at[:N, :H].set(esum)

    # A[t, s] = #edges s -> t (self-loops handled via the hpe term instead).
    # Small-integer counts => exact in bf16.
    # TODO(synk): replace with block-CSR + scalar prefetch for large sparse graphs.
    adj = jnp.zeros((Np, Np), f32).at[tgt, src].add(1.0).astype(bf16)

    # ---- pad + pre-transpose parameters: lane-dense, MXU-native (M,K)x(K,N) ----
    xp = jnp.zeros((Np, Hp), f32).at[:N, :H].set(x.astype(f32))
    wenc_t = jnp.zeros((Hp, Hp), bf16).at[:H, :H].set(params["w_enc"].T.astype(bf16))
    w1_t = jnp.zeros((Hp, H2p), bf16).at[:H, :2 * H].set(params["w1"].T.astype(bf16))
    b1 = jnp.zeros((1, H2p), f32).at[:, :2 * H].set(params["b1"].reshape(1, -1))
    w2_t = jnp.zeros((H2p, Op), bf16).at[:2 * H, :out_dim].set(params["w2"].T.astype(bf16))
    b2 = jnp.zeros((1, Op), f32).at[:, :out_dim].set(params["b2"].reshape(1, -1))

    n_tiles = Np // tile_n
    tile_m = _stage1_tile(Np, tile_n)
    n_tiles_m = Np // tile_m

    # VMEM budget: resident h + double-buffered adjacency panels + weights + small streams.
    stage2_bytes = (2 * tile_n * Np * 2          # adj panels (double-buffered)
                    + 2 * Np * Hp * 2            # resident bf16 h (conservative x2)
                    + 2 * tile_n * Hp * 4        # hpe stream
                    + 2 * Hp * H2p * 2 + 2 * H2p * Op * 2
                    + 2 * (H2p + Op) * 4
                    + 2 * tile_n * Op * 4)       # out stream
    # Clamp to 48 MiB so the same tiling is safe against v7x's 64 MiB physical VMEM.
    vmem_limit = min(48 * 1024 * 1024, max(32 * 1024 * 1024, int(stage2_bytes * 5 // 4)))

    smem = pl.BlockSpec(memory_space=pltpu.MemorySpace.SMEM)

    # ---- stage 1: h = PReLU(x) @ Wenc^T ; outputs bf16 h and f32 (h + esum) ----
    h_bf, hpe = pl.pallas_call(
        encode_kernel,
        out_shape=(jax.ShapeDtypeStruct((Np, Hp), bf16),
                   jax.ShapeDtypeStruct((Np, Hp), f32)),
        grid=(n_tiles_m,),
        in_specs=[smem,
                  pl.BlockSpec((tile_m, Hp), lambda i: (i, 0)),
                  pl.BlockSpec((Hp, Hp), lambda i: (0, 0)),
                  pl.BlockSpec((tile_m, Hp), lambda i: (i, 0))],
        out_specs=[pl.BlockSpec((tile_m, Hp), lambda i: (i, 0)),
                   pl.BlockSpec((tile_m, Hp), lambda i: (i, 0))],
        compiler_params=pltpu.CompilerParams(
            dimension_semantics=("parallel",),
            vmem_limit_bytes=vmem_limit),
    )(params["prelu_a"], xp, wenc_t, esum_p)

    # ---- stage 2: aggr = A @ h + (h + esum) ; out = MLP(aggr) ----
    # 1-D grid over target tiles ("parallel" -> shards across v7x's 2 TCs);
    # h is resident (constant index map), adjacency streamed as (TN, Np) panels.
    out_p = pl.pallas_call(
        decode_kernel,
        out_shape=jax.ShapeDtypeStruct((Np, Op), f32),
        grid=(n_tiles,),
        in_specs=[pl.BlockSpec((tile_n, Np), lambda i: (i, 0)),   # adjacency row panel
                  pl.BlockSpec((Np, Hp), lambda i: (0, 0)),       # h (bf16, resident)
                  pl.BlockSpec((tile_n, Hp), lambda i: (i, 0)),   # h + esum (target tile)
                  pl.BlockSpec((Hp, H2p), lambda i: (0, 0)),      # W1^T (resident)
                  pl.BlockSpec((1, H2p), lambda i: (0, 0)),       # b1
                  pl.BlockSpec((H2p, Op), lambda i: (0, 0)),      # W2^T (resident)
                  pl.BlockSpec((1, Op), lambda i: (0, 0))],       # b2
        out_specs=pl.BlockSpec((tile_n, Op), lambda i: (i, 0)),
        compiler_params=pltpu.CompilerParams(
            dimension_semantics=("parallel",),
            vmem_limit_bytes=vmem_limit),
    )(adj, h_bf, hpe, w1_t, b1, w2_t, b2)

    return out_p[:N, :out_dim]


# ---------------- Pure-JAX reference (matches the PyTorch module) ----------------

def gnn_decoder_reference(params, x, edge_index, edge_attr):
    N, H = x.shape
    a = params["prelu_a"][0, 0]
    h = jnp.where(x > 0, x, a * x)
    h = h @ params["w_enc"].T
    loops = jnp.arange(N, dtype=edge_index.dtype)
    src = jnp.concatenate([edge_index[0], loops])
    tgt = jnp.concatenate([edge_index[1], loops])
    sl_attr = jnp.zeros((N, 2), edge_attr.dtype).at[:, 0].set(5)
    ea = jnp.concatenate([edge_attr, sl_attr], axis=0)
    emb = params["edge_emb1"][ea[:, 0]] + params["edge_emb2"][ea[:, 1]]
    msgs = h[src] + emb
    aggr = jnp.zeros((N, H), jnp.float32).at[tgt].add(msgs)
    z = aggr @ params["w1"].T + params["b1"]
    z = z * jax.nn.sigmoid(z)
    return z @ params["w2"].T + params["b2"]


def init_params(key, hidden_dim, out_dim):
    ks = jax.random.split(key, 6)
    scale = 0.1
    return {
        "prelu_a": jnp.full((1, 1), 0.25, jnp.float32),   # PReLU default init
        "w_enc": scale * jax.random.normal(ks[0], (hidden_dim, hidden_dim), jnp.float32),
        "edge_emb1": scale * jax.random.normal(ks[1], (NUM_BOND_TYPE, hidden_dim), jnp.float32),
        "edge_emb2": scale * jax.random.normal(ks[2], (NUM_BOND_DIRECTION, hidden_dim), jnp.float32),
        "w1": scale * jax.random.normal(ks[3], (2 * hidden_dim, hidden_dim), jnp.float32),
        "b1": jnp.zeros((2 * hidden_dim,), jnp.float32),
        "w2": scale * jax.random.normal(ks[4], (out_dim, 2 * hidden_dim), jnp.float32),
        "b2": jnp.zeros((out_dim,), jnp.float32),
    }


if __name__ == "__main__":
    key = jax.random.PRNGKey(0)
    k_param, k_x, k_src, k_tgt, k_a0, k_a1 = jax.random.split(key, 6)

    N, H, OUT, E = 8, 32, 16, 12   # nodes, hidden_dim, out_dim, directed edges

    params = init_params(k_param, H, OUT)

    x = jax.random.normal(k_x, (N, H), jnp.float32)
    edge_index = jnp.stack([
        jax.random.randint(k_src, (E,), 0, N, jnp.int32),
        jax.random.randint(k_tgt, (E,), 0, N, jnp.int32),
    ], axis=0)                                                   # (2, E)
    edge_attr = jnp.stack([
        jax.random.randint(k_a0, (E,), 0, NUM_BOND_TYPE, jnp.int32),
        jax.random.randint(k_a1, (E,), 0, NUM_BOND_DIRECTION, jnp.int32),
    ], axis=1)                                                   # (E, 2)

    out = gnn_decoder_forward(params, x, edge_index, edge_attr)
    jax.block_until_ready(out)
    assert out.shape == (N, OUT)

    ref = gnn_decoder_reference(params, x, edge_index, edge_attr)
    max_err = float(jnp.max(jnp.abs(out - ref)))
    assert jnp.allclose(out, ref, rtol=5e-2, atol=5e-2), f"max abs err {max_err}"

    print("KERNEL_OK")
</pallas_src>

<mosaic_0001>
module attributes {stable_mosaic.version = 11 : i64} {
  func.func @encode_kernel(%arg0: i32, %arg1: memref<1x1xf32, #tpu.memory_space<smem>>, %arg2: memref<256x128xf32, #tpu.memory_space<vmem>>, %arg3: memref<128x128xbf16, #tpu.memory_space<vmem>>, %arg4: memref<256x128xf32, #tpu.memory_space<vmem>>, %arg5: memref<256x128xbf16, #tpu.memory_space<vmem>>, %arg6: memref<256x128xf32, #tpu.memory_space<vmem>>) attributes {dimension_semantics = [#tpu.dimension_semantics<parallel>], iteration_bounds = array<i64: 1>, scalar_prefetch = 0 : i64, scratch_operands = 0 : i64, tpu.core_type = #tpu.core_type<tc>, window_params = [{transform_indices = @transform_0, window_bounds = array<i64: 1, 1>}, {transform_indices = @transform_1, window_bounds = array<i64: 256, 128>}, {pipeline_mode = #tpu.pipeline_mode<synchronous>, transform_indices = @transform_2, window_bounds = array<i64: 128, 128>}, {transform_indices = @transform_3, window_bounds = array<i64: 256, 128>}, {transform_indices = @transform_4, window_bounds = array<i64: 256, 128>}, {transform_indices = @transform_5, window_bounds = array<i64: 256, 128>}]} {
    %c0 = arith.constant 0 : index
    %c0_0 = arith.constant 0 : index
    %0 = memref.load %arg1[%c0, %c0_0] : memref<1x1xf32, #tpu.memory_space<smem>>
    %c0_1 = arith.constant 0 : index
    %c0_2 = arith.constant 0 : index
    %1 = vector.load %arg2[%c0_1, %c0_2] : memref<256x128xf32, #tpu.memory_space<vmem>>, vector<256x128xf32>
    %cst = arith.constant 0.000000e+00 : f32
    %2 = vector.broadcast %cst : f32 to vector<256x128xf32>
    %3 = arith.cmpf ogt, %1, %2 : vector<256x128xf32>
    %4 = vector.broadcast %0 : f32 to vector<256x128xf32>
    %5 = arith.mulf %4, %1 : vector<256x128xf32>
    %6 = arith.select %3, %1, %5 : vector<256x128xi1>, vector<256x128xf32>
    %7 = arith.truncf %6 : vector<256x128xf32> to vector<256x128xbf16>
    %c0_3 = arith.constant 0 : index
    %c0_4 = arith.constant 0 : index
    %8 = vector.load %arg3[%c0_3, %c0_4] : memref<128x128xbf16, #tpu.memory_space<vmem>>, vector<128x128xbf16>
    %cst_5 = arith.constant dense<0.000000e+00> : vector<256x128xf32>
    %9 = tpu.matmul %7, %8, %cst_5 {dimension_numbers = #tpu.dot_dimension_numbers<[1], [0], [0], [1], [0, 0, 1, 1], [], []>} : vector<256x128xbf16>, vector<128x128xbf16>, vector<256x128xf32> -> vector<256x128xf32>
    %10 = arith.truncf %9 : vector<256x128xf32> to vector<256x128xbf16>
    %c0_6 = arith.constant 0 : index
    %c0_7 = arith.constant 0 : index
    %11 = vector.load %arg5[%c0_6, %c0_7] : memref<256x128xbf16, #tpu.memory_space<vmem>>, vector<256x128xbf16>
    tpu.vector_store %arg5[%c0_6, %c0_7], %10 {strides = array<i32>} : memref<256x128xbf16, #tpu.memory_space<vmem>>, vector<256x128xbf16>,
    %c0_8 = arith.constant 0 : index
    %c0_9 = arith.constant 0 : index
    %12 = vector.load %arg4[%c0_8, %c0_9] : memref<256x128xf32, #tpu.memory_space<vmem>>, vector<256x128xf32>
    %13 = arith.addf %9, %12 : vector<256x128xf32>
    %c0_10 = arith.constant 0 : index
    %c0_11 = arith.constant 0 : index
    %14 = vector.load %arg6[%c0_10, %c0_11] : memref<256x128xf32, #tpu.memory_space<vmem>>, vector<256x128xf32>
    tpu.vector_store %arg6[%c0_10, %c0_11], %13 {strides = array<i32>} : memref<256x128xf32, #tpu.memory_space<vmem>>, vector<256x128xf32>,
    return
  }
  func.func @transform_0(%arg0: i32) -> (i32, i32) {
    %c0_i32 = arith.constant 0 : i32
    %c0_i32_0 = arith.constant 0 : i32
    %c0_i32_1 = arith.constant 0 : i32
    return %c0_i32, %c0_i32_0 : i32, i32
  }
  func.func @transform_1(%arg0: i32) -> (i32, i32) {
    %c0_i32 = arith.constant 0 : i32
    %c0_i32_0 = arith.constant 0 : i32
    return %arg0, %c0_i32 : i32, i32
  }
  func.func @transform_2(%arg0: i32) -> (i32, i32) {
    %c0_i32 = arith.constant 0 : i32
    %c0_i32_0 = arith.constant 0 : i32
    %c0_i32_1 = arith.constant 0 : i32
    return %c0_i32, %c0_i32_0 : i32, i32
  }
  func.func @transform_3(%arg0: i32) -> (i32, i32) {
    %c0_i32 = arith.constant 0 : i32
    %c0_i32_0 = arith.constant 0 : i32
    return %arg0, %c0_i32 : i32, i32
  }
  func.func @transform_4(%arg0: i32) -> (i32, i32) {
    %c0_i32 = arith.constant 0 : i32
    %c0_i32_0 = arith.constant 0 : i32
    return %arg0, %c0_i32 : i32, i32
  }
  func.func @transform_5(%arg0: i32) -> (i32, i32) {
    %c0_i32 = arith.constant 0 : i32
    %c0_i32_0 = arith.constant 0 : i32
    return %arg0, %c0_i32 : i32, i32
  }
}

</mosaic_0001>

<bundles_post_ra>
// kernel: tpu_custom_call.1
= control target key start
LH: loop header
LB: loop body
LE: loop exit
PB: predicated region body
PF: predicated region fallthrough
CT: control target
= control target key end

     0   :  { %12 = vsyncpa [#allocation4], 0  ;;  %s1219_s0 = inlined_call_operand.<no memory space> [shape: f32[1,1], index: 0, kind: input, shape index: {}]   ;;  %s1220_s1 = inlined_call_operand.hbm [shape: f32[256,128], index: 1, kind: input, shape index: {}]   ;;  %s1221_s2 = inlined_call_operand.hbm [shape: bf16[128,128], index: 2, kind: input, shape index: {}]   ;;  %s1222_s3 = inlined_call_operand.hbm [shape: f32[256,128], index: 3, kind: input, shape index: {}]   ;;  %s1223_s4 = inlined_call_operand.hbm [shape: bf16[256,128], index: 4, kind: output, shape index: {0}]   ;;  %s1224_s5 = inlined_call_operand.hbm [shape: f32[256,128], index: 5, kind: output, shape index: {1}]  }
   0x1   :  { %13 = vsyncpa [#allocation7], 0 }
   0x2   :  { %14 = vsyncpa [#allocation5], 0 }
   0x3   :  { %15 = vsyncpa [#allocation11], 0  ;;  %s1105_s18 = smov [#allocation6]  }
   0x4   :  { %s35_s19 = sshll.u32 %s1105_s18, 4  ;;  %s36_s19 = int_to_ptr.vmem [resolvable:$true] %s35_s19 }
   0x5   :  { %s1005_s20 = scalar_lea.vmem %s36_s19, 1024  ;;  %p1010_p1 = scmp.lt.s32.totalorder %s36_s19, %s36_s19 }
   0x6   :  { %p1006_p0 = scmp.ne.s32.totalorder %s36_s19, %s1005_s20  ;;  %p1011_p2 = scmp.lt.s32.totalorder %s1005_s20, %s1005_s20 }
   0x8   :  { %p1012_p3 = por %p1011_p2, %p1010_p1 }
   0xa   :  { %p1013_p4 = pnand %p1012_p3, %p1006_p0 }
   0xc   :  { %1016 = shalt.err (!%p1013_p4)
}
   0xd   :  { %s1106_s21 = smov 64   ;;  %s1107_s22 = smov 4  }
   0xe   :  { %41 = dma.hbm_to_vmem [thread:$0]  %s1221_s2, 1024, %s36_s19, [#allocation7], %s1106_s21, %s1106_s21, %s1107_s22  }
   0xf   :  { %s1108_s25 = smov [#allocation3]  }
  0x10   :  { %s23_s26 = sshll.u32 %s1108_s25, 4  ;;  %s24_s26 = int_to_ptr.vmem [resolvable:$true] %s23_s26 }
  0x11   :  { %s1025_s27 = scalar_lea.vmem %s24_s26, 4096  ;;  %p1030_p6 = scmp.lt.s32.totalorder %s24_s26, %s24_s26 }
  0x12   :  { %p1026_p5 = scmp.ne.s32.totalorder %s24_s26, %s1025_s27  ;;  %p1031_p7 = scmp.lt.s32.totalorder %s1025_s27, %s1025_s27 }
  0x14   :  { %p1032_p8 = por %p1031_p7, %p1030_p6 }
  0x16   :  { %p1033_p9 = pnand %p1032_p8, %p1026_p5 }
  0x18   :  { %1036 = shalt.err (!%p1033_p9)
}
  0x19   :  { %s1109_s28 = smov 128   ;;  %s1110_s29 = smov 8  }
  0x1a   :  { %29 = dma.hbm_to_vmem [thread:$0]  %s1220_s1, 4096, %s24_s26, [#allocation4], %s1109_s28, %s1109_s28, %s1110_s29  }
  0x1b   :  { %s1111_s2 = smov [#allocation8]  }
  0x1c   :  { %s47_s7 = sshll.u32 %s1111_s2, 4  ;;  %s48_s7 = int_to_ptr.vmem [resolvable:$true] %s47_s7 }
  0x1d   :  { %s1045_s8 = scalar_lea.vmem %s48_s7, 4096  ;;  %p1050_p11 = scmp.lt.s32.totalorder %s48_s7, %s48_s7 }
  0x1e   :  { %p1046_p10 = scmp.ne.s32.totalorder %s48_s7, %s1045_s8  ;;  %p1051_p12 = scmp.lt.s32.totalorder %s1045_s8, %s1045_s8 }
  0x20   :  { %p1052_p13 = por %p1051_p12, %p1050_p11 }
  0x22   :  { %p1053_p0 = pnand %p1052_p13, %p1046_p10 }
  0x24   :  { %1056 = shalt.err (!%p1053_p0)
}
  0x25   :  { %53 = dma.hbm_to_vmem [thread:$0]  %s1222_s3, 4096, %s48_s7, [#allocation7], %s1109_s28, %s1109_s28, %s1110_s29  }
  0x26   :  { %1097 = dma.done.wait [#allocation4], 4096  }
  0x27   :  { %1098 = vsyncadd [#allocation4], 4294963200 }
  0x28   :  { %1099 = dma.done.wait [#allocation7], 5120  }
  0x29   :  { %1100 = vsyncadd [#allocation7], 4294962176  ;;  %v989_v0 = vld [vmem:[#allocation6 + $0x38] sm:$0xff]   ;;  %v990_v1 = vld [vmem:[#allocation6 + $0x30] sm:$0xff]   ;;  %v1165_v3 = vstv %s1219_s0  ;;  %s1112_s0 = smov [#allocation9]   ;;  %s1113_s12 = smov [#allocation10]  }
  0x2a   :  { %916 = vmatprep.subr.bf16.mxu0 %v989_v0  ;;  %964 = vmatprep.subr.bf16.mxu1 %v989_v0  ;;  %v991_v2 = vld [vmem:[#allocation6 + $0x28] sm:$0xff]   ;;  %v992_v4 = vld [vmem:[#allocation6 + $0x20] sm:$0xff]   ;;  %v993_v15 = vld [vmem:[#allocation6 + $0x18] sm:$0xff]   ;;  %s696_s3 = sshll.u32 %s1112_s0, 4  ;;  %s708_s13 = sshll.u32 %s1113_s12, 4  ;;  %s697_s3 = int_to_ptr.vmem [resolvable:$true] %s696_s3  ;;  %s709_s13 = int_to_ptr.vmem [resolvable:$true] %s708_s13 }
  0x2b   :  { %917 = vmatpush3.bf16.msra.mxu0 %v989_v0  ;;  %972 = vmatpush3.bf16.msra.mxu1 %v989_v0  ;;  %v65_v5 = vld [vmem:[#allocation3] sm:$0xff]  ;;  %v66_v6 = vld [vmem:[#allocation3 + $0x8] sm:$0xff]  ;;  %v67_v20 = vld [vmem:[#allocation3 + $0x10] sm:$0xff]  ;;  %s1057_s14 = scalar_lea.vmem %s697_s3, 2048  ;;  %p1062_p2 = scmp.lt.s32.totalorder %s697_s3, %s697_s3 }
  0x2c   :  { %918 = vmatprep.subr.bf16.mxu0 %v990_v1  ;;  %965 = vmatprep.subr.bf16.mxu1 %v990_v1  ;;  %v81_v7 = vld [vmem:[#allocation3 + $0x80] sm:$0xff]  ;;  %vm97_vm0 = vcmp.gt.f32.partialorder %v65_v5, 0.0  ;;  %vm98_vm1 = vcmp.gt.f32.partialorder %v66_v6, 0.0  ;;  %v130_v8 = vmul.f32 %v1165_v3, %v65_v5  ;;  %v131_v9 = vmul.f32 %v1165_v3, %v66_v6  ;;  %v82_v10 = vld [vmem:[#allocation3 + $0x88] sm:$0xff]  ;;  %v68_v21 = vld [vmem:[#allocation3 + $0x18] sm:$0xff]  ;;  %p1058_p1 = scmp.ne.s32.totalorder %s697_s3, %s1057_s14  ;;  %p1063_p3 = scmp.lt.s32.totalorder %s1057_s14, %s1057_s14 }
  0x2d   :  { %vm113_vm2 = vcmp.gt.f32.partialorder %v81_v7, 0.0  ;;  %vm114_vm3 = vcmp.gt.f32.partialorder %v82_v10, 0.0  ;;  %v146_v11 = vmul.f32 %v1165_v3, %v81_v7  ;;  %v147_v12 = vmul.f32 %v1165_v3, %v82_v10  ;;  %v994_v22 = vld [vmem:[#allocation6 + $0x10] sm:$0xff]   ;;  %v84_v24 = vld [vmem:[#allocation3 + $0x98] sm:$0xff]  ;;  %v69_v29 = vld [vmem:[#allocation3 + $0x20] sm:$0xff] }
  0x2e   :  { %v162_v13 = vsel %vm97_vm0, %v65_v5, %v130_v8  ;;  %v163_v14 = vsel %vm98_vm1, %v66_v6, %v131_v9  ;;  %v83_v23 = vld [vmem:[#allocation3 + $0x90] sm:$0xff]  ;;  %v132_v25 = vmul.f32 %v1165_v3, %v67_v20  ;;  %v133_v26 = vmul.f32 %v1165_v3, %v68_v21  ;;  %v995_v30 = vld [vmem:[#allocation6 + $0x8] sm:$0xff]   ;;  %v85_v32 = vld [vmem:[#allocation3 + $0xa0] sm:$0xff]  ;;  %p1064_p4 = por %p1063_p3, %p1062_p2 }
  0x2f   :  { %919 = vmatpush3.bf16.msra.mxu0 %v990_v1  ;;  %973 = vmatpush3.bf16.msra.mxu1 %v990_v1  ;;  %v194_v16 = vpack.c.bf16 %v163_v14, %v162_v13  ;;  %v178_v17 = vsel %vm113_vm2, %v81_v7, %v146_v11  ;;  %v179_v18 = vsel %vm114_vm3, %v82_v10, %v147_v12  ;;  %vm99_vm4 = vcmp.gt.f32.partialorder %v67_v20, 0.0  ;;  %v70_v31 = vld [vmem:[#allocation3 + $0x28] sm:$0xff]  ;;  %v996_v40 = vld [vmem:[#allocation6] sm:$0xff]   ;;  %v71_v43 = vld [vmem:[#allocation3 + $0x30] sm:$0xff] }
  0x30   :  { %920 = vmatprep.subr.bf16.mxu0 %v991_v2  ;;  %966 = vmatprep.subr.bf16.mxu1 %v991_v2  ;;  %v202_v19 = vpack.c.bf16 %v179_v18, %v178_v17  ;;  %vm100_vm5 = vcmp.gt.f32.partialorder %v68_v21, 0.0  ;;  %v148_v27 = vmul.f32 %v1165_v3, %v83_v23  ;;  %v149_v28 = vmul.f32 %v1165_v3, %v84_v24  ;;  %v86_v33 = vld [vmem:[#allocation3 + $0xa8] sm:$0xff]  ;;  %v72_v44 = vld [vmem:[#allocation3 + $0x38] sm:$0xff]  ;;  %v87_v47 = vld [vmem:[#allocation3 + $0xb0] sm:$0xff]  ;;  %p1065_p5 = pnand %p1064_p4, %p1058_p1 }
  0x31   :  { %932 = vmatprep.mubr.bf16.mxu0 %v194_v16  ;;  %vm115_vm6 = vcmp.gt.f32.partialorder %v83_v23, 0.0  ;;  %vm116_vm7 = vcmp.gt.f32.partialorder %v84_v24, 0.0  ;;  %v164_v34 = vsel %vm99_vm4, %v67_v20, %v132_v25  ;;  %v165_v35 = vsel %vm100_vm5, %v68_v21, %v133_v26  ;;  %v88_v48 = vld [vmem:[#allocation3 + $0xb8] sm:$0xff]  ;;  %v73_v52 = vld [vmem:[#allocation3 + $0x40] sm:$0xff]  ;;  %v74_v53 = vld [vmem:[#allocation3 + $0x48] sm:$0xff] }
  0x32   :  { %948 = vmatprep.mubr.bf16.mxu1 %v202_v19  ;;  %v134_v36 = vmul.f32 %v1165_v3, %v69_v29  ;;  %v180_v37 = vsel %vm115_vm6, %v83_v23, %v148_v27  ;;  %v181_v38 = vsel %vm116_vm7, %v84_v24, %v149_v28  ;;  %v135_v39 = vmul.f32 %v1165_v3, %v70_v31  ;;  %v89_v59 = vld [vmem:[#allocation3 + $0xc0] sm:$0xff]  ;;  %v90_v60 = vld [vmem:[#allocation3 + $0xc8] sm:$0xff]  ;;  %v75_v10 = vld [vmem:[#allocation3 + $0x50] sm:$0xff] }
  0x33   :  { %921 = vmatpush3.bf16.msra.mxu0 %v991_v2  ;;  %974 = vmatpush3.bf16.msra.mxu1 %v991_v2  ;;  %vm101_vm8 = vcmp.gt.f32.partialorder %v69_v29, 0.0  ;;  %vm102_vm9 = vcmp.gt.f32.partialorder %v70_v31, 0.0  ;;  %v150_v41 = vmul.f32 %v1165_v3, %v85_v32  ;;  %v151_v42 = vmul.f32 %v1165_v3, %v86_v33  ;;  %v76_v11 = vld [vmem:[#allocation3 + $0x58] sm:$0xff]  ;;  %v91_v12 = vld [vmem:[#allocation3 + $0xd0] sm:$0xff]  ;;  %v77_v18 = vld [vmem:[#allocation3 + $0x60] sm:$0xff] }
  0x34   :  { %922 = vmatprep.subr.bf16.mxu0 %v992_v4  ;;  %967 = vmatprep.subr.bf16.mxu1 %v992_v4  ;;  %vm117_vm10 = vcmp.gt.f32.partialorder %v85_v32, 0.0  ;;  %vm118_vm11 = vcmp.gt.f32.partialorder %v86_v33, 0.0  ;;  %v195_v45 = vpack.c.bf16 %v165_v35, %v164_v34  ;;  %v203_v46 = vpack.c.bf16 %v181_v38, %v180_v37  ;;  %v92_v13 = vld [vmem:[#allocation3 + $0xd8] sm:$0xff]  ;;  %v78_v19 = vld [vmem:[#allocation3 + $0x68] sm:$0xff]  ;;  %v79_v38 = vld [vmem:[#allocation3 + $0x70] sm:$0xff] }
  0x35   :  { %v166_v49 = vsel %vm101_vm8, %v69_v29, %v134_v36  ;;  %v167_v50 = vsel %vm102_vm9, %v70_v31, %v135_v39  ;;  %v136_v51 = vmul.f32 %v1165_v3, %v71_v43  ;;  %v182_v54 = vsel %vm117_vm10, %v85_v32, %v150_v41  ;;  %v94_v23 = vld [vmem:[#allocation3 + $0xe8] sm:$0xff]  ;;  %v80_v41 = vld [vmem:[#allocation3 + $0x78] sm:$0xff] }
  0x36   :  { %v183_v55 = vsel %vm118_vm11, %v86_v33, %v151_v42  ;;  %v137_v56 = vmul.f32 %v1165_v3, %v72_v44  ;;  %vm103_vm12 = vcmp.gt.f32.partialorder %v71_v43, 0.0  ;;  %vm104_vm13 = vcmp.gt.f32.partialorder %v72_v44, 0.0  ;;  %v95_v42 = vld [vmem:[#allocation3 + $0xf0] sm:$0xff] }
  0x37   :  { %923 = vmatpush3.bf16.msra.mxu0 %v992_v4  ;;  %975 = vmatpush3.bf16.msra.mxu1 %v992_v4  ;;  %v152_v57 = vmul.f32 %v1165_v3, %v87_v47  ;;  %v153_v58 = vmul.f32 %v1165_v3, %v88_v48  ;;  %vm119_vm14 = vcmp.gt.f32.partialorder %v87_v47, 0.0  ;;  %vm120_vm15 = vcmp.gt.f32.partialorder %v88_v48, 0.0 }
  0x38   :  { %924 = vmatprep.subr.bf16.mxu0 %v993_v15  ;;  %968 = vmatprep.subr.bf16.mxu1 %v993_v15  ;;  %v138_v61 = vmul.f32 %v1165_v3, %v73_v52  ;;  %v139_v62 = vmul.f32 %v1165_v3, %v74_v53  ;;  %v196_v63 = vpack.c.bf16 %v167_v50, %v166_v49  ;;  %vm105_vm0 = vcmp.gt.f32.partialorder %v73_v52, 0.0 }
  0x39   :  { %v204_v0 = vpack.c.bf16 %v183_v55, %v182_v54  ;;  %vm106_vm1 = vcmp.gt.f32.partialorder %v74_v53, 0.0  ;;  %v168_v1 = vsel %vm103_vm12, %v71_v43, %v136_v51  ;;  %v169_v2 = vsel %vm104_vm13, %v72_v44, %v137_v56  ;;  %v96_v43 = vld [vmem:[#allocation3 + $0xf8] sm:$0xff] }
  0x3a   :  { %v154_v4 = vmul.f32 %v1165_v3, %v89_v59  ;;  %v155_v5 = vmul.f32 %v1165_v3, %v90_v60  ;;  %v184_v6 = vsel %vm119_vm14, %v87_v47, %v152_v57  ;;  %v185_v7 = vsel %vm120_vm15, %v88_v48, %v153_v58  ;;  %v597_v58 = vld [vmem:[#allocation8 + $0x10] sm:$0xff] }
  0x3b   :  { %925 = vmatpush3.bf16.msra.mxu0 %v993_v15  ;;  %976 = vmatpush3.bf16.msra.mxu1 %v993_v15  ;;  %vm121_vm2 = vcmp.gt.f32.partialorder %v89_v59, 0.0  ;;  %vm122_vm3 = vcmp.gt.f32.partialorder %v90_v60, 0.0  ;;  %v170_v8 = vsel %vm105_vm0, %v73_v52, %v138_v61  ;;  %v171_v9 = vsel %vm106_vm1, %v74_v53, %v139_v62  ;;  %v611_v62 = vld [vmem:[#allocation8 + $0x80] sm:$0xff] }
  0x3c   :  { %926 = vmatprep.subr.bf16.mxu0 %v994_v22  ;;  %969 = vmatprep.subr.bf16.mxu1 %v994_v22  ;;  %v197_v14 = vpack.c.bf16 %v169_v2, %v168_v1  ;;  %v205_v15 = vpack.c.bf16 %v185_v7, %v184_v6  ;;  %v186_v16 = vsel %vm121_vm2, %v89_v59, %v154_v4  ;;  %vm107_vm4 = vcmp.gt.f32.partialorder %v75_v10, 0.0  ;;  %v613_v59 = vld [vmem:[#allocation8 + $0x90] sm:$0xff]  ;;  %v598_v4 = vld [vmem:[#allocation8 + $0x18] sm:$0xff] }
  0x3d   :  { %v187_v17 = vsel %vm122_vm3, %v90_v60, %v155_v5  ;;  %v198_v20 = vpack.c.bf16 %v171_v9, %v170_v8  ;;  %vm108_vm5 = vcmp.gt.f32.partialorder %v76_v11, 0.0  ;;  %v140_v21 = vmul.f32 %v1165_v3, %v75_v10  ;;  %v614_v5 = vld [vmem:[#allocation8 + $0x98] sm:$0xff] }
  0x3e   :  { %v141_v24 = vmul.f32 %v1165_v3, %v76_v11  ;;  %vm123_vm6 = vcmp.gt.f32.partialorder %v91_v12, 0.0  ;;  %vm124_vm7 = vcmp.gt.f32.partialorder %v92_v13, 0.0  ;;  %v156_v25 = vmul.f32 %v1165_v3, %v91_v12 }
  0x3f   :  { %927 = vmatpush3.bf16.msra.mxu0 %v994_v22  ;;  %977 = vmatpush3.bf16.msra.mxu1 %v994_v22  ;;  %v93_v22 = vld [vmem:[#allocation3 + $0xe0] sm:$0xff]  ;;  %v206_v26 = vpack.c.bf16 %v187_v17, %v186_v16  ;;  %v157_v27 = vmul.f32 %v1165_v3, %v92_v13  ;;  %v142_v28 = vmul.f32 %v1165_v3, %v77_v18  ;;  %vm109_vm8 = vcmp.gt.f32.partialorder %v77_v18, 0.0 }
  0x40   :  { %928 = vmatprep.subr.bf16.mxu0 %v995_v30  ;;  %970 = vmatprep.subr.bf16.mxu1 %v995_v30  ;;  %v143_v29 = vmul.f32 %v1165_v3, %v78_v19  ;;  %vm110_vm9 = vcmp.gt.f32.partialorder %v78_v19, 0.0  ;;  %v159_v31 = vmul.f32 %v1165_v3, %v94_v23  ;;  %vm125_vm10 = vcmp.gt.f32.partialorder %v93_v22, 0.0 }
  0x41   :  { %vm126_vm11 = vcmp.gt.f32.partialorder %v94_v23, 0.0  ;;  %v172_v32 = vsel %vm107_vm4, %v75_v10, %v140_v21  ;;  %v173_v33 = vsel %vm108_vm5, %v76_v11, %v141_v24  ;;  %v188_v34 = vsel %vm123_vm6, %v91_v12, %v156_v25  ;;  %v596_v10 = vld [vmem:[#allocation8 + $0x8] sm:$0xff] }
  0x42   :  { %v189_v35 = vsel %vm124_vm7, %v92_v13, %v157_v27  ;;  %v174_v36 = vsel %vm109_vm8, %v77_v18, %v142_v28  ;;  %v175_v37 = vsel %vm110_vm9, %v78_v19, %v143_v29  ;;  %v199_v44 = vpack.c.bf16 %v173_v33, %v172_v32  ;;  %v612_v11 = vld [vmem:[#allocation8 + $0x88] sm:$0xff]  ;;  %v601_v18 = vld [vmem:[#allocation8 + $0x30] sm:$0xff]  ;;  %v615_v27 = vld [vmem:[#allocation8 + $0xa0] sm:$0xff] }
  0x43   :  { %929 = vmatpush3.bf16.msra.mxu0 %v995_v30  ;;  %978 = vmatpush3.bf16.msra.mxu1 %v995_v30  ;;  %v158_v30 = vmul.f32 %v1165_v3, %v93_v22  ;;  %vm111_vm12 = vcmp.gt.f32.partialorder %v79_v38, 0.0  ;;  %v144_v47 = vmul.f32 %v1165_v3, %v79_v38  ;;  %v145_v49 = vmul.f32 %v1165_v3, %v80_v41  ;;  %v617_v19 = vld [vmem:[#allocation8 + $0xb0] sm:$0xff]  ;;  %v602_v32 = vld [vmem:[#allocation8 + $0x38] sm:$0xff] }
  0x44   :  { %930 = vmatprep.subr.bf16.mxu0 %v996_v40  ;;  %971 = vmatprep.subr.bf16.mxu1 %v996_v40  ;;  %v160_v50 = vmul.f32 %v1165_v3, %v95_v42  ;;  %v161_v51 = vmul.f32 %v1165_v3, %v96_v43  ;;  %vm112_vm13 = vcmp.gt.f32.partialorder %v80_v41, 0.0  ;;  %vm127_vm14 = vcmp.gt.f32.partialorder %v95_v42, 0.0  ;;  %v595_v3 = vld [vmem:[#allocation8] sm:$0xff]  ;;  %v618_v33 = vld [vmem:[#allocation8 + $0xb8] sm:$0xff] }
  0x45   :  { %v190_v39 = vsel %vm125_vm10, %v93_v22, %v158_v30  ;;  %vm128_vm15 = vcmp.gt.f32.partialorder %v96_v43, 0.0  ;;  %v176_v52 = vsel %vm111_vm12, %v79_v38, %v144_v47  ;;  %v177_v53 = vsel %vm112_vm13, %v80_v41, %v145_v49  ;;  %v600_v38 = vld [vmem:[#allocation8 + $0x28] sm:$0xff]  ;;  %v621_v47 = vld [vmem:[#allocation8 + $0xd0] sm:$0xff] }
  0x46   :  { %v192_v54 = vsel %vm127_vm14, %v95_v42, %v160_v50  ;;  %v193_v55 = vsel %vm128_vm15, %v96_v43, %v161_v51  ;;  %v201_v56 = vpack.c.bf16 %v177_v53, %v176_v52 }
  0x47   :  { %931 = vmatpush3.bf16.msra.mxu0 %v996_v40  ;;  %979 = vmatpush3.bf16.msra.mxu1 %v996_v40  ;;  %v191_v40 = vsel %vm126_vm11, %v94_v23, %v159_v31  ;;  %v209_v57 = vpack.c.bf16 %v193_v55, %v192_v54  ;;  %v603_v54 = vld [vmem:[#allocation8 + $0x40] sm:$0xff] }
  0x48   :  { %v208_v48 = vpack.c.bf16 %v191_v40, %v190_v39  ;;  %v616_v39 = vld [vmem:[#allocation8 + $0xa8] sm:$0xff]  ;;  %v619_v55 = vld [vmem:[#allocation8 + $0xc0] sm:$0xff] }
  0x4a   :  { %933 = vmatmul.mubr.bf16.vlgmr.msra.gmra.mxu0 %v195_v45  ;;  %949 = vmatmul.mubr.bf16.vlgmr.msra.gmra.mxu1 %v203_v46  ;;  %v207_v45 = vpack.c.bf16 %v189_v35, %v188_v34  ;;  %v200_v46 = vpack.c.bf16 %v175_v37, %v174_v36 }
  0x4b   :  { %936 = vmatprep.mubr.bf16.mxu0 %v196_v63  ;;  %952 = vmatprep.mubr.bf16.mxu1 %v204_v0 }
  0x52   :  { %937 = vmatmul.mubr.bf16.gmra.mxu0 %v197_v14  ;;  %953 = vmatmul.mubr.bf16.gmra.mxu1 %v205_v15 }
  0x53   :  { %940 = vmatprep.mubr.bf16.mxu0 %v198_v20  ;;  %956 = vmatprep.mubr.bf16.mxu1 %v206_v26  ;;  %v599_v26 = vld [vmem:[#allocation8 + $0x20] sm:$0xff] }
  0x5a   :  { %941 = vmatmul.mubr.bf16.gmra.mxu0 %v199_v44  ;;  %957 = vmatmul.mubr.bf16.gmra.mxu1 %v207_v45 }
  0x5b   :  { %944 = vmatprep.mubr.bf16.mxu0 %v200_v46  ;;  %960 = vmatprep.mubr.bf16.mxu1 %v208_v48  ;;  %v605_v46 = vld [vmem:[#allocation8 + $0x50] sm:$0xff] }
  0x62   :  { %945 = vmatmul.mubr.bf16.gmra.mxu0 %v201_v56  ;;  %961 = vmatmul.mubr.bf16.gmra.mxu1 %v209_v57 }
 0x10a   :  { %v934_v60 = vpop.f32.mrf.mxu0  ;;  %v950_v61 = vpop.f32.mrf.mxu1 }
 0x10b   :  { %v629_v63 = vadd.f32 %v934_v60, %v597_v58  ;;  %v645_v0 = vadd.f32 %v950_v61, %v613_v59 }
 0x10c   :  { %v308_v1 = vpop.f32.mrf.mxu0  ;;  %v372_v2 = vpop.f32.mrf.mxu1 }
 0x10d   :  { %661 = vst [vmem:[#allocation10 + $0x10] sm:$0xff] %v629_v63  ;;  %677 = vst [vmem:[#allocation10 + $0x90] sm:$0xff] %v645_v0  ;;  %v627_v6 = vadd.f32 %v595_v3, %v308_v1  ;;  %v643_v7 = vadd.f32 %v611_v62, %v372_v2 }
 0x10e   :  { %v935_v8 = vpop.f32.mrf.mxu0  ;;  %v951_v9 = vpop.f32.mrf.mxu1 }
 0x10f   :  { %659 = vst [vmem:[#allocation10] sm:$0xff] %v627_v6  ;;  %675 = vst [vmem:[#allocation10 + $0x80] sm:$0xff] %v643_v7  ;;  %v805_v12 = vpack.c.bf16 %v935_v8, %v934_v60  ;;  %v630_v13 = vadd.f32 %v935_v8, %v598_v4  ;;  %v845_v14 = vpack.c.bf16 %v951_v9, %v950_v61  ;;  %v606_v60 = vld [vmem:[#allocation8 + $0x58] sm:$0xff] }
 0x110   :  { %v646_v15 = vadd.f32 %v951_v9, %v614_v5  ;;  %v311_v16 = vpop.f32.mrf.mxu0  ;;  %v375_v17 = vpop.f32.mrf.mxu1  ;;  %v622_v61 = vld [vmem:[#allocation8 + $0xd8] sm:$0xff] }
 0x111   :  { %877 = vst [vmem:[#allocation9 + $0x8] sm:$0xff] %v805_v12   ;;  %662 = vst [vmem:[#allocation10 + $0x18] sm:$0xff] %v630_v13  ;;  %v800_v20 = vpack.c.bf16 %v311_v16, %v308_v1  ;;  %v628_v21 = vadd.f32 %v596_v10, %v311_v16  ;;  %v840_v22 = vpack.c.bf16 %v375_v17, %v372_v2  ;;  %v604_v1 = vld [vmem:[#allocation8 + $0x48] sm:$0xff]  ;;  %v609_v10 = vld [vmem:[#allocation8 + $0x70] sm:$0xff] }
 0x112   :  { %885 = vst [vmem:[#allocation9 + $0x48] sm:$0xff] %v845_v14   ;;  %678 = vst [vmem:[#allocation10 + $0x98] sm:$0xff] %v646_v15  ;;  %v644_v23 = vadd.f32 %v612_v11, %v375_v17  ;;  %v938_v24 = vpop.f32.mrf.mxu0  ;;  %v954_v25 = vpop.f32.mrf.mxu1  ;;  %v620_v2 = vld [vmem:[#allocation8 + $0xc8] sm:$0xff]  ;;  %v625_v11 = vld [vmem:[#allocation8 + $0xf0] sm:$0xff] }
 0x113   :  { %801 = vst [vmem:[#allocation9] sm:$0xff] %v800_v20   ;;  %660 = vst [vmem:[#allocation10 + $0x8] sm:$0xff] %v628_v21  ;;  %v633_v28 = vadd.f32 %v938_v24, %v601_v18  ;;  %v649_v29 = vadd.f32 %v954_v25, %v617_v19  ;;  %v607_v18 = vld [vmem:[#allocation8 + $0x60] sm:$0xff] }
 0x114   :  { %884 = vst [vmem:[#allocation9 + $0x40] sm:$0xff] %v840_v22   ;;  %676 = vst [vmem:[#allocation10 + $0x88] sm:$0xff] %v644_v23  ;;  %v324_v30 = vpop.f32.mrf.mxu0  ;;  %v388_v31 = vpop.f32.mrf.mxu1  ;;  %v623_v19 = vld [vmem:[#allocation8 + $0xe0] sm:$0xff] }
 0x115   :  { %665 = vst [vmem:[#allocation10 + $0x30] sm:$0xff] %v633_v28  ;;  %681 = vst [vmem:[#allocation10 + $0xb0] sm:$0xff] %v649_v29  ;;  %v631_v34 = vadd.f32 %v599_v26, %v324_v30  ;;  %v647_v35 = vadd.f32 %v615_v27, %v388_v31 }
 0x116   :  { %v939_v36 = vpop.f32.mrf.mxu0  ;;  %v955_v37 = vpop.f32.mrf.mxu1 }
 0x117   :  { %663 = vst [vmem:[#allocation10 + $0x20] sm:$0xff] %v631_v34  ;;  %679 = vst [vmem:[#allocation10 + $0xa0] sm:$0xff] %v647_v35  ;;  %v815_v40 = vpack.c.bf16 %v939_v36, %v938_v24  ;;  %v634_v41 = vadd.f32 %v939_v36, %v602_v32  ;;  %v855_v42 = vpack.c.bf16 %v955_v37, %v954_v25  ;;  %v610_v24 = vld [vmem:[#allocation8 + $0x78] sm:$0xff] }
 0x118   :  { %v650_v43 = vadd.f32 %v955_v37, %v618_v33  ;;  %v327_v44 = vpop.f32.mrf.mxu0  ;;  %v391_v45 = vpop.f32.mrf.mxu1  ;;  %v626_v25 = vld [vmem:[#allocation8 + $0xf8] sm:$0xff] }
 0x119   :  { %879 = vst [vmem:[#allocation9 + $0x18] sm:$0xff] %v815_v40   ;;  %666 = vst [vmem:[#allocation10 + $0x38] sm:$0xff] %v634_v41  ;;  %v810_v48 = vpack.c.bf16 %v327_v44, %v324_v30  ;;  %v632_v49 = vadd.f32 %v600_v38, %v327_v44  ;;  %v850_v50 = vpack.c.bf16 %v391_v45, %v388_v31  ;;  %v608_v30 = vld [vmem:[#allocation8 + $0x68] sm:$0xff] }
 0x11a   :  { %887 = vst [vmem:[#allocation9 + $0x58] sm:$0xff] %v855_v42   ;;  %682 = vst [vmem:[#allocation10 + $0xb8] sm:$0xff] %v650_v43  ;;  %v648_v51 = vadd.f32 %v616_v39, %v391_v45  ;;  %v942_v52 = vpop.f32.mrf.mxu0  ;;  %v958_v53 = vpop.f32.mrf.mxu1  ;;  %v624_v31 = vld [vmem:[#allocation8 + $0xe8] sm:$0xff] }
 0x11b   :  { %878 = vst [vmem:[#allocation9 + $0x10] sm:$0xff] %v810_v48   ;;  %664 = vst [vmem:[#allocation10 + $0x28] sm:$0xff] %v632_v49  ;;  %v637_v56 = vadd.f32 %v942_v52, %v605_v46  ;;  %v653_v57 = vadd.f32 %v958_v53, %v621_v47 }
 0x11c   :  { %886 = vst [vmem:[#allocation9 + $0x50] sm:$0xff] %v850_v50   ;;  %680 = vst [vmem:[#allocation10 + $0xa8] sm:$0xff] %v648_v51  ;;  %v340_v58 = vpop.f32.mrf.mxu0  ;;  %v404_v59 = vpop.f32.mrf.mxu1 }
 0x11d   :  { %669 = vst [vmem:[#allocation10 + $0x50] sm:$0xff] %v637_v56  ;;  %685 = vst [vmem:[#allocation10 + $0xd0] sm:$0xff] %v653_v57  ;;  %v635_v3 = vadd.f32 %v603_v54, %v340_v58  ;;  %v651_v62 = vadd.f32 %v619_v55, %v404_v59 }
 0x11e   :  { %v943_v63 = vpop.f32.mrf.mxu0  ;;  %v959_v0 = vpop.f32.mrf.mxu1 }
 0x11f   :  { %667 = vst [vmem:[#allocation10 + $0x40] sm:$0xff] %v635_v3  ;;  %683 = vst [vmem:[#allocation10 + $0xc0] sm:$0xff] %v651_v62  ;;  %v825_v4 = vpack.c.bf16 %v943_v63, %v942_v52  ;;  %v638_v5 = vadd.f32 %v943_v63, %v606_v60  ;;  %v865_v6 = vpack.c.bf16 %v959_v0, %v958_v53 }
 0x120   :  { %v654_v7 = vadd.f32 %v959_v0, %v622_v61  ;;  %v343_v8 = vpop.f32.mrf.mxu0  ;;  %v407_v9 = vpop.f32.mrf.mxu1 }
 0x121   :  { %881 = vst [vmem:[#allocation9 + $0x28] sm:$0xff] %v825_v4   ;;  %670 = vst [vmem:[#allocation10 + $0x58] sm:$0xff] %v638_v5  ;;  %v820_v12 = vpack.c.bf16 %v343_v8, %v340_v58  ;;  %v636_v13 = vadd.f32 %v604_v1, %v343_v8  ;;  %v860_v14 = vpack.c.bf16 %v407_v9, %v404_v59 }
 0x122   :  { %889 = vst [vmem:[#allocation9 + $0x68] sm:$0xff] %v865_v6   ;;  %686 = vst [vmem:[#allocation10 + $0xd8] sm:$0xff] %v654_v7  ;;  %v652_v15 = vadd.f32 %v620_v2, %v407_v9  ;;  %v946_v16 = vpop.f32.mrf.mxu0  ;;  %v962_v17 = vpop.f32.mrf.mxu1 }
 0x123   :  { %880 = vst [vmem:[#allocation9 + $0x20] sm:$0xff] %v820_v12   ;;  %668 = vst [vmem:[#allocation10 + $0x48] sm:$0xff] %v636_v13  ;;  %v641_v20 = vadd.f32 %v946_v16, %v609_v10  ;;  %v657_v21 = vadd.f32 %v962_v17, %v625_v11 }
 0x124   :  { %888 = vst [vmem:[#allocation9 + $0x60] sm:$0xff] %v860_v14   ;;  %684 = vst [vmem:[#allocation10 + $0xc8] sm:$0xff] %v652_v15  ;;  %v356_v22 = vpop.f32.mrf.mxu0  ;;  %v420_v23 = vpop.f32.mrf.mxu1 }
 0x125   :  { %673 = vst [vmem:[#allocation10 + $0x70] sm:$0xff] %v641_v20  ;;  %689 = vst [vmem:[#allocation10 + $0xf0] sm:$0xff] %v657_v21  ;;  %v639_v26 = vadd.f32 %v607_v18, %v356_v22  ;;  %v655_v27 = vadd.f32 %v623_v19, %v420_v23 }
 0x126   :  { %v947_v28 = vpop.f32.mrf.mxu0  ;;  %v963_v29 = vpop.f32.mrf.mxu1 }
 0x127   :  { %671 = vst [vmem:[#allocation10 + $0x60] sm:$0xff] %v639_v26  ;;  %687 = vst [vmem:[#allocation10 + $0xe0] sm:$0xff] %v655_v27  ;;  %v835_v32 = vpack.c.bf16 %v947_v28, %v946_v16  ;;  %v642_v33 = vadd.f32 %v947_v28, %v610_v24  ;;  %v875_v34 = vpack.c.bf16 %v963_v29, %v962_v17 }
 0x128   :  { %v658_v35 = vadd.f32 %v963_v29, %v626_v25  ;;  %v359_v36 = vpop.f32.mrf.mxu0  ;;  %v423_v37 = vpop.f32.mrf.mxu1 }
 0x129   :  { %883 = vst [vmem:[#allocation9 + $0x38] sm:$0xff] %v835_v32   ;;  %674 = vst [vmem:[#allocation10 + $0x78] sm:$0xff] %v642_v33  ;;  %v830_v38 = vpack.c.bf16 %v359_v36, %v356_v22  ;;  %v640_v39 = vadd.f32 %v608_v30, %v359_v36  ;;  %v870_v40 = vpack.c.bf16 %v423_v37, %v420_v23 }
 0x12a   :  { %891 = vst [vmem:[#allocation9 + $0x78] sm:$0xff] %v875_v34   ;;  %690 = vst [vmem:[#allocation10 + $0xf8] sm:$0xff] %v658_v35  ;;  %v656_v41 = vadd.f32 %v624_v31, %v423_v37 }
 0x12b   :  { %882 = vst [vmem:[#allocation9 + $0x30] sm:$0xff] %v830_v38   ;;  %672 = vst [vmem:[#allocation10 + $0x68] sm:$0xff] %v640_v39 }
 0x12c   :  { %890 = vst [vmem:[#allocation9 + $0x70] sm:$0xff] %v870_v40   ;;  %688 = vst [vmem:[#allocation10 + $0xe8] sm:$0xff] %v656_v41 }
 0x12d   :  { %1068 = shalt.err (!%p1065_p5)
}
 0x12e   :  { %702 = dma.vmem_to_hbm [thread:$0]  %s697_s3, 2048, %s1223_s4, [#allocation5], %s1106_s21, %s1106_s21, %s1107_s22  }
 0x12f   :  { %s1077_s17 = scalar_lea.vmem %s709_s13, 4096  ;;  %p1082_p7 = scmp.lt.s32.totalorder %s709_s13, %s709_s13 }
 0x130   :  { %p1078_p6 = scmp.ne.s32.totalorder %s709_s13, %s1077_s17  ;;  %p1083_p8 = scmp.lt.s32.totalorder %s1077_s17, %s1077_s17 }
 0x132   :  { %p1084_p9 = por %p1083_p8, %p1082_p7 }
 0x134   :  { %p1085_p10 = pnand %p1084_p9, %p1078_p6 }
 0x136   :  { %1088 = shalt.err (!%p1085_p10)
}
 0x137   :  { %714 = dma.vmem_to_hbm [thread:$0]  %s709_s13, 4096, %s1224_s5, [#allocation11], %s1109_s28, %s1109_s28, %s1110_s29  }
 0x138   :  { %1101 = dma.done.wait [#allocation5], 2048  }
 0x139   :  { %1102 = vsyncadd [#allocation5], 4294965248 }
 0x13a   :  { %1103 = dma.done.wait [#allocation11], 4096  }
 0x13b   :  { %1104 = vsyncadd [#allocation11], 4294963200 }
 0x13c   :  { %721 = vsyncpa [#allocation4], 1 }
 0x13d   :  { %722 = vsyncpa [#allocation7], 1 }
 0x13e   :  { %723 = vsyncpa [#allocation5], 1 }
 0x13f   :  { %724 = vsyncpa [#allocation11], 1 }

</bundles_post_ra>
